<compile_context>
chip_gen: v5e
topology: v5e:2x2
jax: 0.10.0
libtpu: 0.0.40
codegen_flags: <defaults>
</compile_context>

<pallas_src>
import functools

import jax
import jax.numpy as jnp
from jax.experimental import pallas as pl
from jax.experimental.pallas import tpu as pltpu

EPS = 1e-5                                 # torch.nn.GroupNorm default
_LANE = 128
_VMEM_BUDGET_BYTES = 16 * 1024 * 1024      # conservative vs. 32 MiB scoped default
_TINY_TOTAL_BYTES = 1 * 1024 * 1024        # below this, collapse the grid fully


def _conv1x1_groupnorm_kernel(x_ref, w_ref, g_ref, b_ref, o_ref, *, NB, C, n_valid):
    # x_ref/o_ref: (NB, C, R, 128) VMEM; w_ref: (C*C,) SMEM; g_ref/b_ref: (C,) SMEM.
    inv_n = jnp.float32(1.0 / n_valid)
    for nb in range(NB):                   # static unroll over samples in this block
        # Per-channel dense slabs (R, 128).  f32 math (safe on v5e).
        # TODO(synk): on v6e/v7x with bf16 inputs the conv FMAs could stay bf16
        # (f32 only for the stats accumulators) to halve vreg/VMEM pressure.
        xs = [x_ref[nb, ci, :, :].astype(jnp.float32) for ci in range(C)]

        # 1x1 conv, no bias: C*C broadcast FMAs on the VPU (SMEM scalar weights).
        ys = []
        for co in range(C):
            acc = w_ref[co * C] * xs[0]
            for ci in range(1, C):
                acc = acc + w_ref[co * C + ci] * xs[ci]
            ys.append(acc)                 # (R, 128) f32

        # GroupNorm(num_groups=1): single-pass sum / sum-of-squares over (C, HW).
        # Zero padding (if any) contributes 0 to both sums; divisor is true C*H*W.
        s_vec = ys[0]
        sq_vec = ys[0] * ys[0]
        for co in range(1, C):
            s_vec = s_vec + ys[co]
            sq_vec = sq_vec + ys[co] * ys[co]
        mean = jnp.sum(s_vec) * inv_n
        var = jnp.sum(sq_vec) * inv_n - mean * mean
        inv = jax.lax.rsqrt(var + EPS)

        # Folded per-channel affine: o = y * a_c + b_c; dense, unmasked stores.
        for co in range(C):
            a = g_ref[co].astype(jnp.float32) * inv
            b = b_ref[co].astype(jnp.float32) - mean * a
            o_ref[nb, co, :, :] = (ys[co] * a + b).astype(o_ref.dtype)

    # TODO(synk): the module is named ModelTanh but its forward() has no tanh;
    # intentionally not applied here to match the reference semantics.


def _choose_samples_per_block(N, per_sample_f32_bytes):
    # ~6x factor: double-buffered input + double-buffered output + live f32
    # intermediates (x and y slabs) per sample.
    max_nb = max(1, int(_VMEM_BUDGET_BYTES // max(6 * per_sample_f32_bytes, 1)))
    nb = 1
    for cand in range(min(N, max_nb), 0, -1):
        if N % cand == 0:
            nb = cand
            break
    # Keep >= 2 grid steps (v7x megacore) unless the whole batch is tiny, in
    # which case a single grid step wins (per-step overhead dominates).
    if nb == N and N > 1 and N * per_sample_f32_bytes > _TINY_TOTAL_BYTES:
        for cand in range(N // 2, 0, -1):
            if N % cand == 0:
                nb = cand
                break
    return nb


def model_tanh_forward(x_nchw, conv_w, gn_gamma, gn_beta):
    """x_nchw: (N, C, H, W); conv_w: (C, C) (squeezed 1x1 kernel);
    gn_gamma / gn_beta: (C,). Returns (N, C, H, W)."""
    N, C, H, W = x_nchw.shape
    HW = H * W
    HWp = ((HW + _LANE - 1) // _LANE) * _LANE
    R = HWp // _LANE

    x_flat = x_nchw.reshape(N, C, HW)
    if HWp != HW:
        x_flat = jnp.pad(x_flat, ((0, 0), (0, 0), (0, HWp - HW)))
    x_blk = x_flat.reshape(N, C, R, _LANE)

    w_flat = conv_w.reshape(C * C).astype(jnp.float32)
    gamma = gn_gamma.astype(jnp.float32)
    beta = gn_beta.astype(jnp.float32)

    per_sample_bytes = C * HWp * 4
    NB = _choose_samples_per_block(N, per_sample_bytes)
    grid = (N // NB,)

    kernel = functools.partial(
        _conv1x1_groupnorm_kernel, NB=NB, C=C, n_valid=C * HW)

    itemsize = jnp.dtype(x_nchw.dtype).itemsize
    cost = pl.CostEstimate(
        flops=N * HW * C * (2 * C + 5),
        transcendentals=N,
        bytes_accessed=2 * N * C * HWp * itemsize + (C * C + 2 * C) * 4,
    )

    out_blk = pl.pallas_call(
        kernel,
        out_shape=jax.ShapeDtypeStruct((N, C, R, _LANE), x_nchw.dtype),
        grid_spec=pltpu.PrefetchScalarGridSpec(
            num_scalar_prefetch=0,
            grid=grid,
            in_specs=[
                pl.BlockSpec((NB, C, R, _LANE), lambda i: (i, 0, 0, 0)),
                pl.BlockSpec(memory_space=pltpu.MemorySpace.SMEM),
                pl.BlockSpec(memory_space=pltpu.MemorySpace.SMEM),
                pl.BlockSpec(memory_space=pltpu.MemorySpace.SMEM),
            ],
            out_specs=pl.BlockSpec((NB, C, R, _LANE), lambda i: (i, 0, 0, 0)),
        ),
        compiler_params=pltpu.CompilerParams(
            dimension_semantics=("parallel",),
        ),
        cost_estimate=cost,
    )(x_blk, w_flat, gamma, beta)

    out_flat = out_blk.reshape(N, C, HWp)
    if HWp != HW:
        out_flat = out_flat[..., :HW]
    return out_flat.reshape(N, C, H, W)


def _reference(x_nchw, conv_w, gamma, beta):
    # Pure-JAX reference for sanity checking.
    y = jnp.einsum("oc,nchw->nohw", conv_w, x_nchw)
    mean = jnp.mean(y, axis=(1, 2, 3), keepdims=True)
    var = jnp.mean((y - mean) ** 2, axis=(1, 2, 3), keepdims=True)
    y_n = (y - mean) * jax.lax.rsqrt(var + EPS)
    return y_n * gamma.reshape(1, -1, 1, 1) + beta.reshape(1, -1, 1, 1)


if __name__ == "__main__":
    key = jax.random.PRNGKey(0)
    k_x, k_w, k_g, k_b = jax.random.split(key, 4)

    # Small shapes consistent with the module: Conv2d(3, 3, 1), GroupNorm(1, 3).
    N, C, H, W = 2, 3, 16, 16
    x = jax.random.normal(k_x, (N, C, H, W), dtype=jnp.float32)

    # Deterministic synthetic parameters (shapes from the module's __init__).
    conv_w = jax.random.normal(k_w, (C, C), dtype=jnp.float32) * 0.5  # squeezed 1x1 kernel
    gn_gamma = 1.0 + 0.1 * jax.random.normal(k_g, (C,), dtype=jnp.float32)
    gn_beta = 0.1 * jax.random.normal(k_b, (C,), dtype=jnp.float32)

    out = model_tanh_forward(x, conv_w, gn_gamma, gn_beta)
    out = jax.block_until_ready(out)

    ref = _reference(x, conv_w, gn_gamma, gn_beta)
    assert out.shape == (N, C, H, W)
    assert jnp.allclose(out, ref, atol=1e-4, rtol=1e-4), "mismatch vs reference"

    print("KERNEL_OK")
</pallas_src>

<mosaic_0001>
module attributes {stable_mosaic.version = 11 : i64} {
  func.func @_conv1x1_groupnorm_kernel(%arg0: i32, %arg1: memref<2x3x2x128xf32, #tpu.memory_space<vmem>>, %arg2: memref<9xf32, #tpu.memory_space<smem>>, %arg3: memref<3xf32, #tpu.memory_space<smem>>, %arg4: memref<3xf32, #tpu.memory_space<smem>>, %arg5: memref<2x3x2x128xf32, #tpu.memory_space<vmem>>) attributes {dimension_semantics = [#tpu.dimension_semantics<parallel>], iteration_bounds = array<i64: 1>, scalar_prefetch = 0 : i64, scratch_operands = 0 : i64, tpu.core_type = #tpu.core_type<tc>, window_params = [{transform_indices = @transform_0, window_bounds = array<i64: 2, 3, 2, 128>}, {transform_indices = @transform_1, window_bounds = array<i64: 9>}, {transform_indices = @transform_2, window_bounds = array<i64: 3>}, {transform_indices = @transform_3, window_bounds = array<i64: 3>}, {transform_indices = @transform_4, window_bounds = array<i64: 2, 3, 2, 128>}]} {
    %c0 = arith.constant 0 : index
    %c0_0 = arith.constant 0 : index
    %c0_1 = arith.constant 0 : index
    %c0_2 = arith.constant 0 : index
    %0 = vector.load %arg1[%c0, %c0_0, %c0_1, %c0_2] : memref<2x3x2x128xf32, #tpu.memory_space<vmem>>, vector<1x1x2x128xf32>
    %1 = vector.shape_cast %0 : vector<1x1x2x128xf32> to vector<2x128xf32>
    %c0_3 = arith.constant 0 : index
    %c1 = arith.constant 1 : index
    %c0_4 = arith.constant 0 : index
    %c0_5 = arith.constant 0 : index
    %2 = vector.load %arg1[%c0_3, %c1, %c0_4, %c0_5] : memref<2x3x2x128xf32, #tpu.memory_space<vmem>>, vector<1x1x2x128xf32>
    %3 = vector.shape_cast %2 : vector<1x1x2x128xf32> to vector<2x128xf32>
    %c0_6 = arith.constant 0 : index
    %c2 = arith.constant 2 : index
    %c0_7 = arith.constant 0 : index
    %c0_8 = arith.constant 0 : index
    %4 = vector.load %arg1[%c0_6, %c2, %c0_7, %c0_8] : memref<2x3x2x128xf32, #tpu.memory_space<vmem>>, vector<1x1x2x128xf32>
    %5 = vector.shape_cast %4 : vector<1x1x2x128xf32> to vector<2x128xf32>
    %c0_9 = arith.constant 0 : index
    %6 = memref.load %arg2[%c0_9] : memref<9xf32, #tpu.memory_space<smem>>
    %7 = vector.broadcast %6 : f32 to vector<2x128xf32>
    %8 = arith.mulf %7, %1 : vector<2x128xf32>
    %c1_10 = arith.constant 1 : index
    %9 = memref.load %arg2[%c1_10] : memref<9xf32, #tpu.memory_space<smem>>
    %10 = vector.broadcast %9 : f32 to vector<2x128xf32>
    %11 = arith.mulf %10, %3 : vector<2x128xf32>
    %12 = arith.addf %8, %11 : vector<2x128xf32>
    %c2_11 = arith.constant 2 : index
    %13 = memref.load %arg2[%c2_11] : memref<9xf32, #tpu.memory_space<smem>>
    %14 = vector.broadcast %13 : f32 to vector<2x128xf32>
    %15 = arith.mulf %14, %5 : vector<2x128xf32>
    %16 = arith.addf %12, %15 : vector<2x128xf32>
    %c3 = arith.constant 3 : index
    %17 = memref.load %arg2[%c3] : memref<9xf32, #tpu.memory_space<smem>>
    %18 = vector.broadcast %17 : f32 to vector<2x128xf32>
    %19 = arith.mulf %18, %1 : vector<2x128xf32>
    %c4 = arith.constant 4 : index
    %20 = memref.load %arg2[%c4] : memref<9xf32, #tpu.memory_space<smem>>
    %21 = vector.broadcast %20 : f32 to vector<2x128xf32>
    %22 = arith.mulf %21, %3 : vector<2x128xf32>
    %23 = arith.addf %19, %22 : vector<2x128xf32>
    %c5 = arith.constant 5 : index
    %24 = memref.load %arg2[%c5] : memref<9xf32, #tpu.memory_space<smem>>
    %25 = vector.broadcast %24 : f32 to vector<2x128xf32>
    %26 = arith.mulf %25, %5 : vector<2x128xf32>
    %27 = arith.addf %23, %26 : vector<2x128xf32>
    %c6 = arith.constant 6 : index
    %28 = memref.load %arg2[%c6] : memref<9xf32, #tpu.memory_space<smem>>
    %29 = vector.broadcast %28 : f32 to vector<2x128xf32>
    %30 = arith.mulf %29, %1 : vector<2x128xf32>
    %c7 = arith.constant 7 : index
    %31 = memref.load %arg2[%c7] : memref<9xf32, #tpu.memory_space<smem>>
    %32 = vector.broadcast %31 : f32 to vector<2x128xf32>
    %33 = arith.mulf %32, %3 : vector<2x128xf32>
    %34 = arith.addf %30, %33 : vector<2x128xf32>
    %c8 = arith.constant 8 : index
    %35 = memref.load %arg2[%c8] : memref<9xf32, #tpu.memory_space<smem>>
    %36 = vector.broadcast %35 : f32 to vector<2x128xf32>
    %37 = arith.mulf %36, %5 : vector<2x128xf32>
    %38 = arith.addf %34, %37 : vector<2x128xf32>
    %39 = arith.mulf %16, %16 : vector<2x128xf32>
    %40 = arith.addf %16, %27 : vector<2x128xf32>
    %41 = arith.mulf %27, %27 : vector<2x128xf32>
    %42 = arith.addf %39, %41 : vector<2x128xf32>
    %43 = arith.addf %40, %38 : vector<2x128xf32>
    %44 = arith.mulf %38, %38 : vector<2x128xf32>
    %45 = arith.addf %42, %44 : vector<2x128xf32>
    %46 = vector.shape_cast %43 : vector<2x128xf32> to vector<1x2x128xf32>
    %cst = arith.constant dense<0.000000e+00> : vector<1xf32>
    %47 = vector.multi_reduction <add>, %46, %cst [1, 2] : vector<1x2x128xf32> to vector<1xf32>
    %48 = vector.shape_cast %47 : vector<1xf32> to vector<1x1x1xf32>
    %49 = vector.extract %48[0, 0, 0] : f32 from vector<1x1x1xf32>
    %cst_12 = arith.constant 0.00130208337 : f32
    %50 = arith.mulf %49, %cst_12 : f32
    %51 = vector.shape_cast %45 : vector<2x128xf32> to vector<1x2x128xf32>
    %cst_13 = arith.constant dense<0.000000e+00> : vector<1xf32>
    %52 = vector.multi_reduction <add>, %51, %cst_13 [1, 2] : vector<1x2x128xf32> to vector<1xf32>
    %53 = vector.shape_cast %52 : vector<1xf32> to vector<1x1x1xf32>
    %54 = vector.extract %53[0, 0, 0] : f32 from vector<1x1x1xf32>
    %cst_14 = arith.constant 0.00130208337 : f32
    %55 = arith.mulf %54, %cst_14 : f32
    %56 = arith.mulf %50, %50 : f32
    %57 = arith.subf %55, %56 : f32
    %cst_15 = arith.constant 9.99999974E-6 : f32
    %58 = arith.addf %57, %cst_15 : f32
    %59 = math.rsqrt %58 : f32
    %c0_16 = arith.constant 0 : index
    %60 = memref.load %arg3[%c0_16] : memref<3xf32, #tpu.memory_space<smem>>
    %61 = arith.mulf %60, %59 : f32
    %c0_17 = arith.constant 0 : index
    %62 = memref.load %arg4[%c0_17] : memref<3xf32, #tpu.memory_space<smem>>
    %63 = arith.mulf %50, %61 : f32
    %64 = arith.subf %62, %63 : f32
    %65 = vector.broadcast %61 : f32 to vector<2x128xf32>
    %66 = arith.mulf %16, %65 : vector<2x128xf32>
    %67 = vector.broadcast %64 : f32 to vector<2x128xf32>
    %68 = arith.addf %66, %67 : vector<2x128xf32>
    %c0_18 = arith.constant 0 : index
    %c0_19 = arith.constant 0 : index
    %c0_20 = arith.constant 0 : index
    %c0_21 = arith.constant 0 : index
    %69 = vector.load %arg5[%c0_18, %c0_19, %c0_20, %c0_21] : memref<2x3x2x128xf32, #tpu.memory_space<vmem>>, vector<1x1x2x128xf32>
    %70 = vector.shape_cast %69 : vector<1x1x2x128xf32> to vector<2x128xf32>
    %71 = vector.shape_cast %68 : vector<2x128xf32> to vector<1x1x2x128xf32>
    tpu.vector_store %arg5[%c0_18, %c0_19, %c0_20, %c0_21], %71 {strides = array<i32>} : memref<2x3x2x128xf32, #tpu.memory_space<vmem>>, vector<1x1x2x128xf32>,
    %c1_22 = arith.constant 1 : index
    %72 = memref.load %arg3[%c1_22] : memref<3xf32, #tpu.memory_space<smem>>
    %73 = arith.mulf %72, %59 : f32
    %c1_23 = arith.constant 1 : index
    %74 = memref.load %arg4[%c1_23] : memref<3xf32, #tpu.memory_space<smem>>
    %75 = arith.mulf %50, %73 : f32
    %76 = arith.subf %74, %75 : f32
    %77 = vector.broadcast %73 : f32 to vector<2x128xf32>
    %78 = arith.mulf %27, %77 : vector<2x128xf32>
    %79 = vector.broadcast %76 : f32 to vector<2x128xf32>
    %80 = arith.addf %78, %79 : vector<2x128xf32>
    %c0_24 = arith.constant 0 : index
    %c1_25 = arith.constant 1 : index
    %c0_26 = arith.constant 0 : index
    %c0_27 = arith.constant 0 : index
    %81 = vector.load %arg5[%c0_24, %c1_25, %c0_26, %c0_27] : memref<2x3x2x128xf32, #tpu.memory_space<vmem>>, vector<1x1x2x128xf32>
    %82 = vector.shape_cast %81 : vector<1x1x2x128xf32> to vector<2x128xf32>
    %83 = vector.shape_cast %80 : vector<2x128xf32> to vector<1x1x2x128xf32>
    tpu.vector_store %arg5[%c0_24, %c1_25, %c0_26, %c0_27], %83 {strides = array<i32>} : memref<2x3x2x128xf32, #tpu.memory_space<vmem>>, vector<1x1x2x128xf32>,
    %c2_28 = arith.constant 2 : index
    %84 = memref.load %arg3[%c2_28] : memref<3xf32, #tpu.memory_space<smem>>
    %85 = arith.mulf %84, %59 : f32
    %c2_29 = arith.constant 2 : index
    %86 = memref.load %arg4[%c2_29] : memref<3xf32, #tpu.memory_space<smem>>
    %87 = arith.mulf %50, %85 : f32
    %88 = arith.subf %86, %87 : f32
    %89 = vector.broadcast %85 : f32 to vector<2x128xf32>
    %90 = arith.mulf %38, %89 : vector<2x128xf32>
    %91 = vector.broadcast %88 : f32 to vector<2x128xf32>
    %92 = arith.addf %90, %91 : vector<2x128xf32>
    %c0_30 = arith.constant 0 : index
    %c2_31 = arith.constant 2 : index
    %c0_32 = arith.constant 0 : index
    %c0_33 = arith.constant 0 : index
    %93 = vector.load %arg5[%c0_30, %c2_31, %c0_32, %c0_33] : memref<2x3x2x128xf32, #tpu.memory_space<vmem>>, vector<1x1x2x128xf32>
    %94 = vector.shape_cast %93 : vector<1x1x2x128xf32> to vector<2x128xf32>
    %95 = vector.shape_cast %92 : vector<2x128xf32> to vector<1x1x2x128xf32>
    tpu.vector_store %arg5[%c0_30, %c2_31, %c0_32, %c0_33], %95 {strides = array<i32>} : memref<2x3x2x128xf32, #tpu.memory_space<vmem>>, vector<1x1x2x128xf32>,
    %c1_34 = arith.constant 1 : index
    %c0_35 = arith.constant 0 : index
    %c0_36 = arith.constant 0 : index
    %c0_37 = arith.constant 0 : index
    %96 = vector.load %arg1[%c1_34, %c0_35, %c0_36, %c0_37] : memref<2x3x2x128xf32, #tpu.memory_space<vmem>>, vector<1x1x2x128xf32>
    %97 = vector.shape_cast %96 : vector<1x1x2x128xf32> to vector<2x128xf32>
    %c1_38 = arith.constant 1 : index
    %c1_39 = arith.constant 1 : index
    %c0_40 = arith.constant 0 : index
    %c0_41 = arith.constant 0 : index
    %98 = vector.load %arg1[%c1_38, %c1_39, %c0_40, %c0_41] : memref<2x3x2x128xf32, #tpu.memory_space<vmem>>, vector<1x1x2x128xf32>
    %99 = vector.shape_cast %98 : vector<1x1x2x128xf32> to vector<2x128xf32>
    %c1_42 = arith.constant 1 : index
    %c2_43 = arith.constant 2 : index
    %c0_44 = arith.constant 0 : index
    %c0_45 = arith.constant 0 : index
    %100 = vector.load %arg1[%c1_42, %c2_43, %c0_44, %c0_45] : memref<2x3x2x128xf32, #tpu.memory_space<vmem>>, vector<1x1x2x128xf32>
    %101 = vector.shape_cast %100 : vector<1x1x2x128xf32> to vector<2x128xf32>
    %c0_46 = arith.constant 0 : index
    %102 = memref.load %arg2[%c0_46] : memref<9xf32, #tpu.memory_space<smem>>
    %103 = vector.broadcast %102 : f32 to vector<2x128xf32>
    %104 = arith.mulf %103, %97 : vector<2x128xf32>
    %c1_47 = arith.constant 1 : index
    %105 = memref.load %arg2[%c1_47] : memref<9xf32, #tpu.memory_space<smem>>
    %106 = vector.broadcast %105 : f32 to vector<2x128xf32>
    %107 = arith.mulf %106, %99 : vector<2x128xf32>
    %108 = arith.addf %104, %107 : vector<2x128xf32>
    %c2_48 = arith.constant 2 : index
    %109 = memref.load %arg2[%c2_48] : memref<9xf32, #tpu.memory_space<smem>>
    %110 = vector.broadcast %109 : f32 to vector<2x128xf32>
    %111 = arith.mulf %110, %101 : vector<2x128xf32>
    %112 = arith.addf %108, %111 : vector<2x128xf32>
    %c3_49 = arith.constant 3 : index
    %113 = memref.load %arg2[%c3_49] : memref<9xf32, #tpu.memory_space<smem>>
    %114 = vector.broadcast %113 : f32 to vector<2x128xf32>
    %115 = arith.mulf %114, %97 : vector<2x128xf32>
    %c4_50 = arith.constant 4 : index
    %116 = memref.load %arg2[%c4_50] : memref<9xf32, #tpu.memory_space<smem>>
    %117 = vector.broadcast %116 : f32 to vector<2x128xf32>
    %118 = arith.mulf %117, %99 : vector<2x128xf32>
    %119 = arith.addf %115, %118 : vector<2x128xf32>
    %c5_51 = arith.constant 5 : index
    %120 = memref.load %arg2[%c5_51] : memref<9xf32, #tpu.memory_space<smem>>
    %121 = vector.broadcast %120 : f32 to vector<2x128xf32>
    %122 = arith.mulf %121, %101 : vector<2x128xf32>
    %123 = arith.addf %119, %122 : vector<2x128xf32>
    %c6_52 = arith.constant 6 : index
    %124 = memref.load %arg2[%c6_52] : memref<9xf32, #tpu.memory_space<smem>>
    %125 = vector.broadcast %124 : f32 to vector<2x128xf32>
    %126 = arith.mulf %125, %97 : vector<2x128xf32>
    %c7_53 = arith.constant 7 : index
    %127 = memref.load %arg2[%c7_53] : memref<9xf32, #tpu.memory_space<smem>>
    %128 = vector.broadcast %127 : f32 to vector<2x128xf32>
    %129 = arith.mulf %128, %99 : vector<2x128xf32>
    %130 = arith.addf %126, %129 : vector<2x128xf32>
    %c8_54 = arith.constant 8 : index
    %131 = memref.load %arg2[%c8_54] : memref<9xf32, #tpu.memory_space<smem>>
    %132 = vector.broadcast %131 : f32 to vector<2x128xf32>
    %133 = arith.mulf %132, %101 : vector<2x128xf32>
    %134 = arith.addf %130, %133 : vector<2x128xf32>
    %135 = arith.mulf %112, %112 : vector<2x128xf32>
    %136 = arith.addf %112, %123 : vector<2x128xf32>
    %137 = arith.mulf %123, %123 : vector<2x128xf32>
    %138 = arith.addf %135, %137 : vector<2x128xf32>
    %139 = arith.addf %136, %134 : vector<2x128xf32>
    %140 = arith.mulf %134, %134 : vector<2x128xf32>
    %141 = arith.addf %138, %140 : vector<2x128xf32>
    %142 = vector.shape_cast %139 : vector<2x128xf32> to vector<1x2x128xf32>
    %cst_55 = arith.constant dense<0.000000e+00> : vector<1xf32>
    %143 = vector.multi_reduction <add>, %142, %cst_55 [1, 2] : vector<1x2x128xf32> to vector<1xf32>
    %144 = vector.shape_cast %143 : vector<1xf32> to vector<1x1x1xf32>
    %145 = vector.extract %144[0, 0, 0] : f32 from vector<1x1x1xf32>
    %cst_56 = arith.constant 0.00130208337 : f32
    %146 = arith.mulf %145, %cst_56 : f32
    %147 = vector.shape_cast %141 : vector<2x128xf32> to vector<1x2x128xf32>
    %cst_57 = arith.constant dense<0.000000e+00> : vector<1xf32>
    %148 = vector.multi_reduction <add>, %147, %cst_57 [1, 2] : vector<1x2x128xf32> to vector<1xf32>
    %149 = vector.shape_cast %148 : vector<1xf32> to vector<1x1x1xf32>
    %150 = vector.extract %149[0, 0, 0] : f32 from vector<1x1x1xf32>
    %cst_58 = arith.constant 0.00130208337 : f32
    %151 = arith.mulf %150, %cst_58 : f32
    %152 = arith.mulf %146, %146 : f32
    %153 = arith.subf %151, %152 : f32
    %cst_59 = arith.constant 9.99999974E-6 : f32
    %154 = arith.addf %153, %cst_59 : f32
    %155 = math.rsqrt %154 : f32
    %c0_60 = arith.constant 0 : index
    %156 = memref.load %arg3[%c0_60] : memref<3xf32, #tpu.memory_space<smem>>
    %157 = arith.mulf %156, %155 : f32
    %c0_61 = arith.constant 0 : index
    %158 = memref.load %arg4[%c0_61] : memref<3xf32, #tpu.memory_space<smem>>
    %159 = arith.mulf %146, %157 : f32
    %160 = arith.subf %158, %159 : f32
    %161 = vector.broadcast %157 : f32 to vector<2x128xf32>
    %162 = arith.mulf %112, %161 : vector<2x128xf32>
    %163 = vector.broadcast %160 : f32 to vector<2x128xf32>
    %164 = arith.addf %162, %163 : vector<2x128xf32>
    %c1_62 = arith.constant 1 : index
    %c0_63 = arith.constant 0 : index
    %c0_64 = arith.constant 0 : index
    %c0_65 = arith.constant 0 : index
    %165 = vector.load %arg5[%c1_62, %c0_63, %c0_64, %c0_65] : memref<2x3x2x128xf32, #tpu.memory_space<vmem>>, vector<1x1x2x128xf32>
    %166 = vector.shape_cast %165 : vector<1x1x2x128xf32> to vector<2x128xf32>
    %167 = vector.shape_cast %164 : vector<2x128xf32> to vector<1x1x2x128xf32>
    tpu.vector_store %arg5[%c1_62, %c0_63, %c0_64, %c0_65], %167 {strides = array<i32>} : memref<2x3x2x128xf32, #tpu.memory_space<vmem>>, vector<1x1x2x128xf32>,
    %c1_66 = arith.constant 1 : index
    %168 = memref.load %arg3[%c1_66] : memref<3xf32, #tpu.memory_space<smem>>
    %169 = arith.mulf %168, %155 : f32
    %c1_67 = arith.constant 1 : index
    %170 = memref.load %arg4[%c1_67] : memref<3xf32, #tpu.memory_space<smem>>
    %171 = arith.mulf %146, %169 : f32
    %172 = arith.subf %170, %171 : f32
    %173 = vector.broadcast %169 : f32 to vector<2x128xf32>
    %174 = arith.mulf %123, %173 : vector<2x128xf32>
    %175 = vector.broadcast %172 : f32 to vector<2x128xf32>
    %176 = arith.addf %174, %175 : vector<2x128xf32>
    %c1_68 = arith.constant 1 : index
    %c1_69 = arith.constant 1 : index
    %c0_70 = arith.constant 0 : index
    %c0_71 = arith.constant 0 : index
    %177 = vector.load %arg5[%c1_68, %c1_69, %c0_70, %c0_71] : memref<2x3x2x128xf32, #tpu.memory_space<vmem>>, vector<1x1x2x128xf32>
    %178 = vector.shape_cast %177 : vector<1x1x2x128xf32> to vector<2x128xf32>
    %179 = vector.shape_cast %176 : vector<2x128xf32> to vector<1x1x2x128xf32>
    tpu.vector_store %arg5[%c1_68, %c1_69, %c0_70, %c0_71], %179 {strides = array<i32>} : memref<2x3x2x128xf32, #tpu.memory_space<vmem>>, vector<1x1x2x128xf32>,
    %c2_72 = arith.constant 2 : index
    %180 = memref.load %arg3[%c2_72] : memref<3xf32, #tpu.memory_space<smem>>
    %181 = arith.mulf %180, %155 : f32
    %c2_73 = arith.constant 2 : index
    %182 = memref.load %arg4[%c2_73] : memref<3xf32, #tpu.memory_space<smem>>
    %183 = arith.mulf %146, %181 : f32
    %184 = arith.subf %182, %183 : f32
    %185 = vector.broadcast %181 : f32 to vector<2x128xf32>
    %186 = arith.mulf %134, %185 : vector<2x128xf32>
    %187 = vector.broadcast %184 : f32 to vector<2x128xf32>
    %188 = arith.addf %186, %187 : vector<2x128xf32>
    %c1_74 = arith.constant 1 : index
    %c2_75 = arith.constant 2 : index
    %c0_76 = arith.constant 0 : index
    %c0_77 = arith.constant 0 : index
    %189 = vector.load %arg5[%c1_74, %c2_75, %c0_76, %c0_77] : memref<2x3x2x128xf32, #tpu.memory_space<vmem>>, vector<1x1x2x128xf32>
    %190 = vector.shape_cast %189 : vector<1x1x2x128xf32> to vector<2x128xf32>
    %191 = vector.shape_cast %188 : vector<2x128xf32> to vector<1x1x2x128xf32>
    tpu.vector_store %arg5[%c1_74, %c2_75, %c0_76, %c0_77], %191 {strides = array<i32>} : memref<2x3x2x128xf32, #tpu.memory_space<vmem>>, vector<1x1x2x128xf32>,
    return
  }
  func.func @transform_0(%arg0: i32) -> (i32, i32, i32, i32) {
    %c0_i32 = arith.constant 0 : i32
    %c0_i32_0 = arith.constant 0 : i32
    %c0_i32_1 = arith.constant 0 : i32
    %c0_i32_2 = arith.constant 0 : i32
    return %arg0, %c0_i32, %c0_i32_0, %c0_i32_1 : i32, i32, i32, i32
  }
  func.func @transform_1(%arg0: i32) -> i32 {
    %c0_i32 = arith.constant 0 : i32
    %c0_i32_0 = arith.constant 0 : i32
    return %c0_i32 : i32
  }
  func.func @transform_2(%arg0: i32) -> i32 {
    %c0_i32 = arith.constant 0 : i32
    %c0_i32_0 = arith.constant 0 : i32
    return %c0_i32 : i32
  }
  func.func @transform_3(%arg0: i32) -> i32 {
    %c0_i32 = arith.constant 0 : i32
    %c0_i32_0 = arith.constant 0 : i32
    return %c0_i32 : i32
  }
  func.func @transform_4(%arg0: i32) -> (i32, i32, i32, i32) {
    %c0_i32 = arith.constant 0 : i32
    %c0_i32_0 = arith.constant 0 : i32
    %c0_i32_1 = arith.constant 0 : i32
    %c0_i32_2 = arith.constant 0 : i32
    return %arg0, %c0_i32, %c0_i32_0, %c0_i32_1 : i32, i32, i32, i32
  }
}

</mosaic_0001>

<bundles_post_ra>
// kernel: tpu_custom_call.1
= control target key start
LH: loop header
LB: loop body
LE: loop exit
PB: predicated region body
PF: predicated region fallthrough
CT: control target
= control target key end

     0   :  { %9 = vsyncpa [#allocation3], 0  ;;  %s604_s0 = inlined_call_operand.hbm [shape: f32[2,3,2,128], index: 0, kind: input, shape index: {}]   ;;  %s605_s1 = inlined_call_operand.hbm [shape: f32[9], index: 1, kind: input, shape index: {}]   ;;  %s606_s2 = inlined_call_operand.vmem [shape: f32[3], index: 2, kind: input, shape index: {}]   ;;  %s607_s3 = inlined_call_operand.vmem [shape: f32[3], index: 3, kind: input, shape index: {}]   ;;  %s608_s4 = inlined_call_operand.hbm [shape: f32[2,3,2,128], index: 4, kind: output, shape index: {}]  }
   0x1   :  { %10 = vsyncpa [#allocation5], 0 }
   0x2   :  { %11 = vsyncpa [#allocation6], 0 }
   0x3   :  { %12 = vsyncpa [#allocation10], 0 }
   0x4   :  { %13 = vsyncpa [#allocation4], 0  ;;  %s18_s17 = sshll.u32 %s604_s0, 4  ;;  %s465_s18 = smov [#allocation2]   ;;  %s19_s17 = int_to_ptr.hbm [resolvable:$true] %s18_s17 }
   0x5   :  { %s20_s19 = sshll.u32 %s465_s18, 4  ;;  %s32_s22 = sshll.u32 %s605_s1, 4  ;;  %s21_s19 = int_to_ptr.vmem [resolvable:$true] %s20_s19  ;;  %s33_s22 = int_to_ptr.hbm [resolvable:$true] %s32_s22 }
   0x6   :  { %s466_s23 = smov 32   ;;  %s467_s24 = smov 2  }
   0x7   :  { %26 = dma.hbm_to_vmem [thread:$0]  %s19_s17, 192, %s21_s19, [#allocation3], %s466_s23, %s466_s23, %s467_s24  }
   0x8   :  { %s468_s25 = smov [#allocation7]   ;;  %s41_s0 = sshll.u32 %s606_s2, 4  ;;  %s42_s0 = int_to_ptr.vmem [resolvable:$true] %s41_s0 }
   0x9   :  { %35 = dma.hbm_to_smem %s33_s22, 16, %s468_s25, [#allocation5]  }
   0xa   :  { %s50_s30 = sshll.u32 %s607_s3, 4  ;;  %s469_s5 = smov [#allocation8]   ;;  %s51_s30 = int_to_ptr.vmem [resolvable:$true] %s50_s30 }
   0xb   :  { %44 = dma.vmem_to_smem %s42_s0, 16, %s469_s5, [#allocation6]  }
   0xc   :  { %s470_s1 = smov [#allocation9]  }
   0xd   :  { %53 = dma.vmem_to_smem %s51_s30, 16, %s470_s1, [#allocation10]  }
   0xe   :  { %455 = dma.done.wait [#allocation3], 192  }
   0xf   :  { %456 = vsyncadd [#allocation3], 4294967104 }
  0x10   :  { %457 = dma.done.wait [#allocation5], 16  }
  0x11   :  { %458 = vsyncadd [#allocation5], 4294967280 }
  0x12   :  { %459 = dma.done.wait [#allocation6], 16  }
  0x13   :  { %460 = vsyncadd [#allocation6], 4294967280 }
  0x14   :  { %461 = dma.done.wait [#allocation10], 16  }
  0x15   :  { %462 = vsyncadd [#allocation10], 4294967280 }
  0x16   :  { %70 = sfence }
  0x17   :  { %s76_s2 = sld [smem:[#allocation7]]  ;;  %v71_v0 = vld [vmem:[#allocation2] sm:$0x3]  ;;  %v187_v1 = vld [vmem:[#allocation2 + $0x6] sm:$0x3]  ;;  %vm116_vm0 = vcmask 1041408  }
  0x18   :  { %s324_s6 = sld [smem:[#allocation7 + $0x1]]  ;;  %v73_v2 = vld [vmem:[#allocation2 + $0x2] sm:$0x3]  ;;  %v189_v3 = vld [vmem:[#allocation2 + $0x8] sm:$0x3] }
  0x19   :  { %s325_s7 = sld [smem:[#allocation7 + $0x2]]  ;;  %v75_v4 = vld [vmem:[#allocation2 + $0x4] sm:$0x3]  ;;  %v191_v6 = vld [vmem:[#allocation2 + $0xa] sm:$0x3] }
  0x1a   :  { %s326_s8 = sld [smem:[#allocation7 + $0x3]] }
  0x1b   :  { %s327_s3 = sld [smem:[#allocation7 + $0x4]] }
  0x1c   :  { %s512_s9 = sld [smem:[#allocation7 + $0x5]] }
  0x1d   :  { %v77_v5 = vstv %s76_s2  ;;  %s514_s10 = sld [smem:[#allocation7 + $0x6]] }
  0x1e   :  { %v78_v7 = vmul.f32 %v77_v5, %v71_v0  ;;  %v80_v8 = vstv %s324_s6  ;;  %s516_s11 = sld [smem:[#allocation7 + $0x7]]  ;;  %v194_v9 = vmul.f32 %v187_v1, %v77_v5 }
  0x1f   :  { %v81_v10 = vmul.f32 %v80_v8, %v73_v2  ;;  %v84_v11 = vstv %s325_s7  ;;  %s518_s12 = sld [smem:[#allocation7 + $0x8]]  ;;  %v197_v12 = vmul.f32 %v189_v3, %v80_v8 }
  0x20   :  { %v85_v13 = vmul.f32 %v84_v11, %v75_v4  ;;  %v88_v14 = vstv %s326_s8  ;;  %v201_v15 = vmul.f32 %v191_v6, %v84_v11  ;;  %s558_s20 = sld [smem:[#allocation8]] }
  0x21   :  { %v82_v16 = vadd.f32 %v81_v10, %v78_v7  ;;  %v89_v17 = vmul.f32 %v88_v14, %v71_v0  ;;  %v91_v18 = vstv %s327_s3  ;;  %v198_v19 = vadd.f32 %v197_v12, %v194_v9  ;;  %s560_s21 = sld [smem:[#allocation8 + $0x1]] }
  0x22   :  { %v92_v20 = vmul.f32 %v91_v18, %v73_v2  ;;  %v95_v21 = vstv %s512_s9  ;;  %v205_v22 = vmul.f32 %v187_v1, %v88_v14  ;;  %v208_v23 = vmul.f32 %v189_v3, %v91_v18  ;;  %s562_s22 = sld [smem:[#allocation8 + $0x2]] }
  0x23   :  { %v521_v24 = vadd.f32 %v85_v13, %v82_v16  ;;  %v96_v25 = vmul.f32 %v95_v21, %v75_v4  ;;  %v99_v26 = vstv %s514_s10  ;;  %v526_v33 = vadd.f32 %v201_v15, %v198_v19  ;;  %s564_s25 = sld [smem:[#allocation9]] }
  0x24   :  { %v93_v27 = vadd.f32 %v92_v20, %v89_v17  ;;  %v100_v28 = vmul.f32 %v99_v26, %v71_v0  ;;  %v102_v29 = vstv %s516_s11  ;;  %v209_v30 = vadd.f32 %v208_v23, %v205_v22  ;;  %s566_s26 = sld [smem:[#allocation9 + $0x1]] }
  0x25   :  { %v103_v31 = vmul.f32 %v102_v29, %v73_v2  ;;  %v106_v32 = vstv %s518_s12  ;;  %v212_v34 = vmul.f32 %v191_v6, %v95_v21  ;;  %v216_v37 = vmul.f32 %v187_v1, %v99_v26  ;;  %s569_s28 = sld [smem:[#allocation9 + $0x2]] }
  0x26   :  { %v528_v35 = vadd.f32 %v96_v25, %v93_v27  ;;  %v107_v36 = vmul.f32 %v106_v32, %v75_v4  ;;  %v219_v38 = vmul.f32 %v189_v3, %v102_v29  ;;  %v109_v40 = vmul.f32 %v521_v24, %v521_v24 }
  0x27   :  { %v104_v39 = vadd.f32 %v103_v31, %v100_v28  ;;  %v532_v41 = vadd.f32 %v212_v34, %v209_v30  ;;  %v223_v42 = vmul.f32 %v191_v6, %v106_v32  ;;  %v225_v46 = vmul.f32 %v526_v33, %v526_v33 }
  0x28   :  { %v110_v43 = vadd.f32 %v528_v35, %v521_v24  ;;  %v111_v44 = vmul.f32 %v528_v35, %v528_v35  ;;  %v220_v45 = vadd.f32 %v219_v38, %v216_v37 }
  0x29   :  { %v540_v47 = vadd.f32 %v107_v36, %v104_v39  ;;  %v226_v48 = vadd.f32 %v532_v41, %v526_v33  ;;  %v227_v49 = vmul.f32 %v532_v41, %v532_v41 }
  0x2a   :  { %v546_v50 = vadd.f32 %v223_v42, %v220_v45  ;;  %v112_v52 = vadd.f32 %v111_v44, %v109_v40 }
  0x2b   :  { %v113_v51 = vadd.f32 %v110_v43, %v540_v47  ;;  %v114_v53 = vmul.f32 %v540_v47, %v540_v47  ;;  %v228_v55 = vadd.f32 %v227_v49, %v225_v46 }
  0x2c   :  { %v229_v54 = vadd.f32 %v226_v48, %v546_v50  ;;  %v230_v56 = vmul.f32 %v546_v50, %v546_v50 }
  0x2d   :  { %v117_v57 = vsel %vm116_vm0, %v113_v51, 0.0  ;;  %v115_v59 = vadd.f32 %v114_v53, %v112_v52 }
  0x2e   :  { %118 = vadd.xlane.f32.xlu0 %v117_v57  ;;  %v232_v58 = vsel %vm116_vm0, %v229_v54, 0.0  ;;  %v231_v60 = vadd.f32 %v230_v56, %v228_v55 }
  0x2f   :  { %233 = vadd.xlane.f32.xlu1 %v232_v58  ;;  %v128_v61 = vsel %vm116_vm0, %v115_v59, 0.0 }
  0x30   :  { %v243_v62 = vsel %vm116_vm0, %v231_v60, 0.0 }
  0x36   :  { %129 = vadd.xlane.f32.xlu0 %v128_v61 }
  0x37   :  { %244 = vadd.xlane.f32.xlu1 %v243_v62 }
  0xa1   :  { %v119_v63 = vpop.xlane.xlu0 %118 }
  0xa2   :  { %v120_v0 = vrot.slane %v119_v63, 4  ;;  %v234_v13 = vpop.xlane.xlu1 %233 }
  0xa3   :  { %v235_v15 = vrot.slane %v234_v13, 4 }
  0xa4   :  { %v121_v1 = vadd.f32 %v120_v0, %v119_v63 }
  0xa5   :  { %v236_v18 = vadd.f32 %v235_v15, %v234_v13 }
  0xa6   :  { %v122_v2 = vrot.slane %v121_v1, 2 }
  0xa7   :  { %v237_v20 = vrot.slane %v236_v18, 2 }
  0xa8   :  { %v123_v3 = vadd.f32 %v122_v2, %v121_v1 }
  0xa9   :  { %v130_v4 = vpop.xlane.xlu0 %129  ;;  %v238_v26 = vadd.f32 %v237_v20, %v236_v18 }
  0xaa   :  { %v131_v5 = vrot.slane %v130_v4, 4  ;;  %v124_v6 = vrot.slane %v123_v3, 1  ;;  %v245_v14 = vpop.xlane.xlu1 %244 }
  0xab   :  { %v246_v16 = vrot.slane %v245_v14, 4  ;;  %v239_v30 = vrot.slane %v238_v26, 1 }
  0xac   :  { %v132_v7 = vadd.f32 %v131_v5, %v130_v4  ;;  %v125_v8 = vadd.f32 %v124_v6, %v123_v3 }
  0xad   :  { %v247_v19 = vadd.f32 %v246_v16, %v245_v14  ;;  %v240_v36 = vadd.f32 %v239_v30, %v238_v26 }
  0xae   :  { %v133_v9 = vrot.slane %v132_v7, 2  ;;  %348 = vpush %v125_v8 }
  0xaf   :  { %v248_v22 = vrot.slane %v247_v19, 2 }
  0xb0   :  { %v134_v10 = vadd.f32 %v133_v9, %v132_v7 }
  0xb1   :  { %v249_v27 = vadd.f32 %v248_v22, %v247_v19 }
  0xb2   :  { %v135_v11 = vrot.slane %v134_v10, 1 }
  0xb3   :  { %v250_v31 = vrot.slane %v249_v27, 1 }
  0xb4   :  { %v136_v12 = vadd.f32 %v135_v11, %v134_v10 }
  0xb5   :  { %v251_v37 = vadd.f32 %v250_v31, %v249_v27 }
  0xb6   :  { %350 = vpush %v136_v12 }
  0xdf   :  { %s349_s13 = spop %348 }
  0xe0   :  { %s554_s14 = smul.f32 0.0013020834, %s349_s13 }
  0xe2   :  { %s139_s16 = smul.f32 %s554_s14, %s554_s14 }
  0xe7   :  { %s351_s15 = spop %350 }
  0xe8   :  { %s138_s17 = smul.f32 0.0013020834, %s351_s15 }
  0xea   :  { %s140_s18 = ssub.f32 %s138_s17, %s139_s16 }
  0xec   :  { %s141_s19 = sadd.f32 1e-05, %s140_s18 }
  0xee   :  { %v142_v17 = vstv %s141_s19 }
  0xef   :  { %367 = vrsqrt.f32 %v142_v17  ;;  %vm149_vm2 = vweird.f32 %v142_v17 }
  0xf5   :  { %v368_v21 = vpop.eup %367 }
  0xf6   :  { %v144_v23 = vmul.f32 %v368_v21, %v142_v17  ;;  %vm150_vm1 = vweird.f32 %v368_v21 }
  0xf7   :  { %vm151_vm3 = vmor %vm149_vm2, %vm150_vm1 }
  0xf8   :  { %v145_v25 = vmul.f32 %v368_v21, %v144_v23 }
  0xfa   :  { %v146_v28 = vmul.f32 0.5, %v145_v25 }
  0xfc   :  { %v147_v29 = vsub.f32 1.5, %v146_v28 }
  0xfe   :  { %v148_v32 = vmul.f32 %v368_v21, %v147_v29 }
 0x100   :  { %v152_v34 = vsel %vm151_vm3, %v368_v21, %v148_v32 }
 0x101   :  { %352 = vpush %v152_v34 }
 0x102   :  { %354 = vpush %v240_v36 }
 0x103   :  { %356 = vpush %v251_v37 }
 0x132   :  { %s353_s27 = spop %352 }
 0x133   :  { %s155_s0 = smul.f32 %s353_s27, %s558_s20  ;;  %s355_s30 = spop %354 }
 0x134   :  { %s165_s29 = smul.f32 %s353_s27, %s560_s21  ;;  %s357_s2 = spop %356 }
 0x135   :  { %s157_s5 = smul.f32 %s155_s0, %s554_s14  ;;  %v159_v38 = vstv %s155_s0 }
 0x136   :  { %s167_s1 = smul.f32 %s165_s29, %s554_s14  ;;  %v169_v39 = vstv %s165_s29  ;;  %v160_v40 = vmul.f32 %v159_v38, %v521_v24 }
 0x137   :  { %s158_s6 = ssub.f32 %s564_s25, %s157_s5  ;;  %s176_s7 = smul.f32 %s353_s27, %s562_s22  ;;  %v170_v43 = vmul.f32 %v169_v39, %v528_v35 }
 0x138   :  { %s168_s8 = ssub.f32 %s566_s26, %s167_s1  ;;  %s578_s3 = smul.f32 0.0013020834, %s355_s30 }
 0x139   :  { %v161_v42 = vstv %s158_s6  ;;  %s178_s9 = smul.f32 %s176_s7, %s554_s14  ;;  %v180_v44 = vstv %s176_s7  ;;  %s471_s5 = smov [#allocation11]  }
 0x13a   :  { %v162_v45 = vadd.f32 %v161_v42, %v160_v40  ;;  %v171_v46 = vstv %s168_s8  ;;  %s253_s10 = smul.f32 0.0013020834, %s357_s2  ;;  %v181_v49 = vmul.f32 %v180_v44, %v540_v47  ;;  %s308_s6 = sshll.u32 %s608_s4, 4  ;;  %s309_s6 = int_to_ptr.hbm [resolvable:$true] %s308_s6 }
 0x13b   :  { %v172_v48 = vadd.f32 %v171_v46, %v170_v43  ;;  %s179_s11 = ssub.f32 %s569_s28, %s178_s9  ;;  %s254_s12 = smul.f32 %s578_s3, %s578_s3 }
 0x13c   :  { %163 = vst [vmem:[#allocation11] sm:$0x3] %v162_v45 }
 0x13d   :  { %174 = vst [vmem:[#allocation11 + $0x2] sm:$0x3] %v172_v48  ;;  %v182_v24 = vstv %s179_s11  ;;  %s255_s13 = ssub.f32 %s253_s10, %s254_s12 }
 0x13e   :  { %v183_v51 = vadd.f32 %v182_v24, %v181_v49 }
 0x13f   :  { %s256_s15 = sadd.f32 1e-05, %s255_s13 }
 0x140   :  { %185 = vst [vmem:[#allocation11 + $0x4] sm:$0x3] %v183_v51 }
 0x141   :  { %v257_v35 = vstv %s256_s15 }
 0x142   :  { %369 = vrsqrt.f32 %v257_v35  ;;  %vm264_vm5 = vweird.f32 %v257_v35 }
 0x148   :  { %v370_v52 = vpop.eup %369 }
 0x149   :  { %v259_v53 = vmul.f32 %v370_v52, %v257_v35  ;;  %vm265_vm4 = vweird.f32 %v370_v52 }
 0x14a   :  { %vm266_vm6 = vmor %vm264_vm5, %vm265_vm4 }
 0x14b   :  { %v260_v54 = vmul.f32 %v370_v52, %v259_v53 }
 0x14d   :  { %v261_v55 = vmul.f32 0.5, %v260_v54 }
 0x14f   :  { %v262_v56 = vsub.f32 1.5, %v261_v55 }
 0x151   :  { %v263_v47 = vmul.f32 %v370_v52, %v262_v56 }
 0x153   :  { %v267_v57 = vsel %vm266_vm6, %v370_v52, %v263_v47 }
 0x154   :  { %358 = vpush %v267_v57 }
 0x185   :  { %s359_s14 = spop %358 }
 0x186   :  { %s270_s16 = smul.f32 %s359_s14, %s558_s20  ;;  %s306_s20 = sshll.u32 %s471_s5, 4  ;;  %s307_s20 = int_to_ptr.vmem [resolvable:$true] %s306_s20 }
 0x187   :  { %s281_s17 = smul.f32 %s359_s14, %s560_s21 }
 0x188   :  { %s272_s18 = smul.f32 %s270_s16, %s578_s3  ;;  %v274_v58 = vstv %s270_s16 }
 0x189   :  { %s283_s19 = smul.f32 %s281_s17, %s578_s3  ;;  %v285_v59 = vstv %s281_s17  ;;  %v275_v60 = vmul.f32 %v274_v58, %v526_v33 }
 0x18a   :  { %s273_s27 = ssub.f32 %s564_s25, %s272_s18  ;;  %s292_s0 = smul.f32 %s359_s14, %s562_s22  ;;  %v286_v62 = vmul.f32 %v285_v59, %v532_v41 }
 0x18b   :  { %s284_s29 = ssub.f32 %s566_s26, %s283_s19 }
 0x18c   :  { %v276_v61 = vstv %s273_s27  ;;  %s294_s30 = smul.f32 %s292_s0, %s578_s3  ;;  %v296_v63 = vstv %s292_s0 }
 0x18d   :  { %v277_v0 = vadd.f32 %v276_v61, %v275_v60  ;;  %v287_v1 = vstv %s284_s29  ;;  %v297_v3 = vmul.f32 %v296_v63, %v546_v50 }
 0x18e   :  { %v288_v2 = vadd.f32 %v287_v1, %v286_v62  ;;  %s295_s21 = ssub.f32 %s569_s28, %s294_s30 }
 0x18f   :  { %279 = vst [vmem:[#allocation11 + $0x6] sm:$0x3] %v277_v0 }
 0x190   :  { %290 = vst [vmem:[#allocation11 + $0x8] sm:$0x3] %v288_v2  ;;  %v298_v33 = vstv %s295_s21 }
 0x191   :  { %v299_v4 = vadd.f32 %v298_v33, %v297_v3 }
 0x193   :  { %301 = vst [vmem:[#allocation11 + $0xa] sm:$0x3] %v299_v4 }
 0x194   :  { %314 = dma.vmem_to_hbm [thread:$0]  %s307_s20, 192, %s309_s6, [#allocation4], %s466_s23, %s466_s23, %s467_s24  }
 0x195   :  { %463 = dma.done.wait [#allocation4], 192  }
 0x196   :  { %464 = vsyncadd [#allocation4], 4294967104 }
 0x197   :  { %319 = vsyncpa [#allocation3], 1 }
 0x198   :  { %320 = vsyncpa [#allocation4], 1 }
 0x199   :  { %321 = vsyncpa [#allocation5], 1 }
 0x19a   :  { %322 = vsyncpa [#allocation6], 1 }
 0x19b   :  { %323 = vsyncpa [#allocation10], 1 }

</bundles_post_ra>
